<compile_context>
chip_gen: v6e
topology: v6e:2x2x1
jax: 0.10.0
libtpu: 0.0.40
codegen_flags: <defaults>
</compile_context>

<pallas_src>
import functools
import math

import jax
import jax.numpy as jnp
from jax.experimental import pallas as pl
from jax.experimental.pallas import tpu as pltpu

EPS = 1e-6


# --------------------------------------------------------------------------
# small helpers
# --------------------------------------------------------------------------
def _row_tile(n, max_tile):
    """Largest row tile (multiple of 8, <= max_tile) that divides n."""
    for t in (max_tile, 512, 256, 128, 64, 32, 16, 8):
        if t <= max_tile and t <= n and n % t == 0:
            return t
    return n  # full dimension is always a legal block


def _ln_math(x, a, b):
    """torch-style LayerNorm: a*(x-mean)/(std_unbiased+eps)+b  (f32 math)."""
    d = x.shape[-1]
    mean = jnp.mean(x, axis=-1, keepdims=True)
    xc = x - mean
    var_unbiased = jnp.sum(xc * xc, axis=-1, keepdims=True) * (1.0 / (d - 1))
    inv = pl.reciprocal(jnp.sqrt(var_unbiased) + EPS, approx=True)  # EUP slot
    return a * xc * inv + b


# --------------------------------------------------------------------------
# fused attention sublayer kernel:  out = x + W_o @ MHA(LN(x), kv, kv)
# --------------------------------------------------------------------------
def _attn_sublayer_kernel(x_ref, kv_ref, m_ref, ln_a_ref, ln_b_ref,
                          wq_ref, bq_ref, wkv_ref, bkv_ref, wo_ref, bo_ref,
                          o_ref, *, n_heads, normalize_kv):
    x = x_ref[0].astype(jnp.float32)          # (tq, D)  residual + query src
    kv = kv_ref[0].astype(jnp.float32)        # (S, D)   key/value source
    mask = m_ref[0]                           # (tq, S) or (1, S)

    ln_a = ln_a_ref[...].astype(jnp.float32)  # (1, D)
    ln_b = ln_b_ref[...].astype(jnp.float32)

    xn_q = _ln_math(x, ln_a, ln_b)
    xn_kv = _ln_math(kv, ln_a, ln_b) if normalize_kv else kv

    # fused projections (Q separate, K/V concatenated -> wider-N matmul)
    q = jnp.dot(xn_q, wq_ref[...], preferred_element_type=jnp.float32) + bq_ref[...]
    kvp = jnp.dot(xn_kv, wkv_ref[...], preferred_element_type=jnp.float32) + bkv_ref[...]
    d_model = q.shape[-1]
    k = kvp[:, :d_model]
    v = kvp[:, d_model:]

    dk = d_model // n_heads
    scale = 1.0 / math.sqrt(dk)

    head_outs = []
    for h in range(n_heads):                  # unrolled, all 2-D MXU ops
        sl = slice(h * dk, (h + 1) * dk)
        qh, kh, vh = q[:, sl], k[:, sl], v[:, sl]
        s = jax.lax.dot_general(qh, kh, (((1,), (1,)), ((), ())),
                                preferred_element_type=jnp.float32) * scale
        s = jnp.where(mask == 0, -1e9, s)
        s = s - jnp.max(s, axis=-1, keepdims=True)
        p = jnp.exp(s)
        p = p * pl.reciprocal(jnp.sum(p, axis=-1, keepdims=True), approx=True)
        head_outs.append(jnp.dot(p, vh, preferred_element_type=jnp.float32))
    attn = jnp.concatenate(head_outs, axis=-1)                       # (tq, D)

    y = jnp.dot(attn, wo_ref[...], preferred_element_type=jnp.float32) + bo_ref[...]
    o_ref[0] = (x + y).astype(o_ref.dtype)                           # residual fused


def attn_sublayer(x, kv_src, mask, ln_a, ln_b, p, n_heads, normalize_kv):
    """x:(B,T,D), kv_src:(B,S,D), mask:(mb,T,S) or (mb,1,S)."""
    B, T, D = x.shape
    S = kv_src.shape[1]
    tq = _row_tile(T, 128)
    grid = (B, T // tq)

    wkv = jnp.concatenate([p['wk'], p['wv']], axis=1)     # (D, 2D)
    bkv = jnp.concatenate([p['bk'], p['bv']], axis=0)     # (2D,)

    mb = mask.shape[0]
    if mask.shape[1] == 1:                                # (mb,1,S): all queries
        m_block = (1, 1, S)
        m_index = (lambda b, qi: (b, 0, 0)) if mb == B else (lambda b, qi: (0, 0, 0))
    else:                                                 # (mb,T,S): per-query
        m_block = (1, tq, S)
        m_index = (lambda b, qi: (b, qi, 0)) if mb == B else (lambda b, qi: (0, qi, 0))

    kernel = functools.partial(_attn_sublayer_kernel,
                               n_heads=n_heads, normalize_kv=normalize_kv)
    return pl.pallas_call(
        kernel,
        grid=grid,
        out_shape=jax.ShapeDtypeStruct((B, T, D), x.dtype),
        in_specs=[
            pl.BlockSpec((1, tq, D), lambda b, qi: (b, qi, 0)),   # x (q tile)
            pl.BlockSpec((1, S, D), lambda b, qi: (b, 0, 0)),     # kv source
            pl.BlockSpec(m_block, m_index),                       # compact mask
            pl.BlockSpec((1, D), lambda b, qi: (0, 0)),           # ln a
            pl.BlockSpec((1, D), lambda b, qi: (0, 0)),           # ln b
            pl.BlockSpec((D, D), lambda b, qi: (0, 0)),           # wq
            pl.BlockSpec((1, D), lambda b, qi: (0, 0)),           # bq
            pl.BlockSpec((D, 2 * D), lambda b, qi: (0, 0)),       # wkv
            pl.BlockSpec((1, 2 * D), lambda b, qi: (0, 0)),       # bkv
            pl.BlockSpec((D, D), lambda b, qi: (0, 0)),           # wo
            pl.BlockSpec((1, D), lambda b, qi: (0, 0)),           # bo
        ],
        out_specs=pl.BlockSpec((1, tq, D), lambda b, qi: (b, qi, 0)),
        compiler_params=pltpu.CompilerParams(
            dimension_semantics=("parallel", "parallel")),
    )(x, kv_src, mask, ln_a.reshape(1, D), ln_b.reshape(1, D),
      p['wq'], p['bq'].reshape(1, D), wkv, bkv.reshape(1, 2 * D),
      p['wo'], p['bo'].reshape(1, D))


# --------------------------------------------------------------------------
# fused FFN sublayer kernel:  out = x + W2 @ relu(W1 @ LN(x) + b1) + b2
# --------------------------------------------------------------------------
def _ffn_sublayer_kernel(x_ref, a_ref, b_ref, w1_ref, b1_ref, w2_ref, b2_ref,
                         o_ref):
    x = x_ref[...].astype(jnp.float32)                              # (tm, D)
    xn = _ln_math(x, a_ref[...].astype(jnp.float32), b_ref[...].astype(jnp.float32))
    h = jnp.dot(xn, w1_ref[...], preferred_element_type=jnp.float32) + b1_ref[...]
    h = jnp.maximum(h, 0.0)
    y = jnp.dot(h, w2_ref[...], preferred_element_type=jnp.float32) + b2_ref[...]
    o_ref[...] = (x + y).astype(o_ref.dtype)                        # residual fused


def ffn_sublayer(x, ln_a, ln_b, f):
    B, T, D = x.shape
    M = B * T
    F_ = f['w1'].shape[1]
    tm = _row_tile(M, 256)
    x2 = x.reshape(M, D)
    out = pl.pallas_call(
        _ffn_sublayer_kernel,
        grid=(M // tm,),
        out_shape=jax.ShapeDtypeStruct((M, D), x.dtype),
        in_specs=[
            pl.BlockSpec((tm, D), lambda i: (i, 0)),
            pl.BlockSpec((1, D), lambda i: (0, 0)),
            pl.BlockSpec((1, D), lambda i: (0, 0)),
            pl.BlockSpec((D, F_), lambda i: (0, 0)),
            pl.BlockSpec((1, F_), lambda i: (0, 0)),
            pl.BlockSpec((F_, D), lambda i: (0, 0)),
            pl.BlockSpec((1, D), lambda i: (0, 0)),
        ],
        out_specs=pl.BlockSpec((tm, D), lambda i: (i, 0)),
        compiler_params=pltpu.CompilerParams(dimension_semantics=("parallel",)),
    )(x2, ln_a.reshape(1, D), ln_b.reshape(1, D),
      f['w1'], f['b1'].reshape(1, F_), f['w2'], f['b2'].reshape(1, D))
    return out.reshape(B, T, D)


# --------------------------------------------------------------------------
# final LayerNorm (row-tiled)
# --------------------------------------------------------------------------
def _layernorm_kernel(x_ref, a_ref, b_ref, o_ref):
    x = x_ref[...].astype(jnp.float32)
    y = _ln_math(x, a_ref[...].astype(jnp.float32), b_ref[...].astype(jnp.float32))
    o_ref[...] = y.astype(o_ref.dtype)


def layernorm(x, a, b):
    B, T, D = x.shape
    M = B * T
    tm = _row_tile(M, 512)
    x2 = x.reshape(M, D)
    out = pl.pallas_call(
        _layernorm_kernel,
        grid=(M // tm,),
        out_shape=jax.ShapeDtypeStruct((M, D), x.dtype),
        in_specs=[pl.BlockSpec((tm, D), lambda i: (i, 0)),
                  pl.BlockSpec((1, D), lambda i: (0, 0)),
                  pl.BlockSpec((1, D), lambda i: (0, 0))],
        out_specs=pl.BlockSpec((tm, D), lambda i: (i, 0)),
        compiler_params=pltpu.CompilerParams(dimension_semantics=("parallel",)),
    )(x2, a.reshape(1, D), b.reshape(1, D))
    return out.reshape(B, T, D)


# --------------------------------------------------------------------------
# Decoder forward
# --------------------------------------------------------------------------
def decoder_forward(x, memory, src_mask, tgt_mask, params, H):
    B, T, D = x.shape
    S = memory.shape[1]
    # compact masks (drop the broadcast head dim); never tiled out to f32
    # (B,1,Tq,S) in HBM -- broadcast happens through the BlockSpec index_map.
    tgt_c = tgt_mask.reshape(tgt_mask.shape[0], T, T)
    src_c = src_mask.reshape(src_mask.shape[0], 1, S)

    for lp in params['layers']:
        # sublayer 0: x + self_attn(norm(x))          (one fused pallas_call)
        x = attn_sublayer(x, x, tgt_c, lp['ln0_a'], lp['ln0_b'],
                          lp['self_attn'], H, normalize_kv=True)
        # sublayer 1: x + src_attn(norm(x), memory)   (one fused pallas_call)
        x = attn_sublayer(x, memory, src_c, lp['ln1_a'], lp['ln1_b'],
                          lp['src_attn'], H, normalize_kv=False)
        # sublayer 2: x + ffn(norm(x))                (one fused pallas_call)
        x = ffn_sublayer(x, lp['ln2_a'], lp['ln2_b'], lp['ffn'])
    return layernorm(x, params['norm_a'], params['norm_b'])


# --------------------------------------------------------------------------
# Pure-JAX reference (same math) for a sanity check
# --------------------------------------------------------------------------
def ref_layernorm(x, a, b):
    mean = x.mean(-1, keepdims=True)
    xc = x - mean
    std = jnp.sqrt(jnp.sum(xc * xc, -1, keepdims=True) / (x.shape[-1] - 1))
    return a * xc / (std + EPS) + b


def ref_mha(xq, xk, xv, mask, p, H):
    B, Tq, D = xq.shape
    S = xk.shape[1]
    dk = D // H
    q = (xq @ p['wq'] + p['bq']).reshape(B, Tq, H, dk).transpose(0, 2, 1, 3)
    k = (xk @ p['wk'] + p['bk']).reshape(B, S, H, dk).transpose(0, 2, 1, 3)
    v = (xv @ p['wv'] + p['bv']).reshape(B, S, H, dk).transpose(0, 2, 1, 3)
    s = jnp.einsum('bhtd,bhsd->bhts', q, k) / math.sqrt(dk)
    s = jnp.where(mask == 0, -1e9, s)
    p_ = jax.nn.softmax(s, axis=-1)
    o = jnp.einsum('bhts,bhsd->bhtd', p_, v).transpose(0, 2, 1, 3).reshape(B, Tq, D)
    return o @ p['wo'] + p['bo']


def ref_decoder(x, memory, src_mask, tgt_mask, params, H):
    for lp in params['layers']:
        xn = ref_layernorm(x, lp['ln0_a'], lp['ln0_b'])
        x = x + ref_mha(xn, xn, xn, tgt_mask, lp['self_attn'], H)
        xn = ref_layernorm(x, lp['ln1_a'], lp['ln1_b'])
        x = x + ref_mha(xn, memory, memory, src_mask, lp['src_attn'], H)
        xn = ref_layernorm(x, lp['ln2_a'], lp['ln2_b'])
        f = lp['ffn']
        x = x + jnp.maximum(xn @ f['w1'] + f['b1'], 0.0) @ f['w2'] + f['b2']
    return ref_layernorm(x, params['norm_a'], params['norm_b'])


# --------------------------------------------------------------------------
# Deterministic parameter init
# --------------------------------------------------------------------------
def init_params(key, d_model, d_ff, N):
    def dense(k, fan_in, fan_out):
        k1, k2 = jax.random.split(k)
        w = jax.random.normal(k1, (fan_in, fan_out), jnp.float32) / math.sqrt(fan_in)
        b = 0.01 * jax.random.normal(k2, (fan_out,), jnp.float32)
        return w, b

    layers = []
    lkeys = jax.random.split(key, N)
    for li in range(N):
        ks = jax.random.split(lkeys[li], 10)

        def attn_p(kk):
            wq, bq = dense(kk[0], d_model, d_model)
            wk, bk = dense(kk[1], d_model, d_model)
            wv, bv = dense(kk[2], d_model, d_model)
            wo, bo = dense(kk[3], d_model, d_model)
            return dict(wq=wq, bq=bq, wk=wk, bk=bk, wv=wv, bv=bv, wo=wo, bo=bo)

        w1, b1 = dense(ks[8], d_model, d_ff)
        w2, b2 = dense(ks[9], d_ff, d_model)
        layers.append(dict(
            self_attn=attn_p(ks[0:4]),
            src_attn=attn_p(ks[4:8]),
            ffn=dict(w1=w1, b1=b1, w2=w2, b2=b2),
            ln0_a=jnp.ones((d_model,), jnp.float32), ln0_b=jnp.zeros((d_model,), jnp.float32),
            ln1_a=jnp.ones((d_model,), jnp.float32), ln1_b=jnp.zeros((d_model,), jnp.float32),
            ln2_a=jnp.ones((d_model,), jnp.float32), ln2_b=jnp.zeros((d_model,), jnp.float32),
        ))
    return dict(layers=layers,
                norm_a=jnp.ones((d_model,), jnp.float32),
                norm_b=jnp.zeros((d_model,), jnp.float32))


if __name__ == "__main__":
    B, T, S, D, H, D_FF, N_LAYERS = 2, 8, 8, 32, 4, 64, 2

    key = jax.random.PRNGKey(0)
    kx, km, kp = jax.random.split(key, 3)
    x = jax.random.normal(kx, (B, T, D), jnp.float32)          # target-side activations
    memory = jax.random.normal(km, (B, S, D), jnp.float32)     # encoder memory
    params = init_params(kp, D, D_FF, N_LAYERS)

    # masks (as in the annotated transformer): causal tgt mask, all-ones src mask
    tgt_mask = jnp.tril(jnp.ones((T, T), jnp.float32))[None, None, :, :]   # (1,1,T,T)
    tgt_mask = jnp.broadcast_to(tgt_mask, (B, 1, T, T))
    src_mask = jnp.ones((B, 1, 1, S), jnp.float32)

    out = decoder_forward(x, memory, src_mask, tgt_mask, params, H)
    out = jax.block_until_ready(out)

    ref = ref_decoder(x, memory, src_mask, tgt_mask, params, H)
    assert out.shape == (B, T, D)
    assert jnp.all(jnp.isfinite(out))
    assert jnp.allclose(out, ref, atol=2e-2, rtol=2e-2)

    print("KERNEL_OK")
</pallas_src>

<mosaic_0001>
module attributes {stable_mosaic.version = 11 : i64} {
  func.func @_attn_sublayer_kernel(%arg0: i32, %arg1: i32, %arg2: memref<1x8x32xf32, #tpu.memory_space<vmem>>, %arg3: memref<1x8x32xf32, #tpu.memory_space<vmem>>, %arg4: memref<1x8x8xf32, #tpu.memory_space<vmem>>, %arg5: memref<1x32xf32, #tpu.memory_space<vmem>>, %arg6: memref<1x32xf32, #tpu.memory_space<vmem>>, %arg7: memref<32x32xf32, #tpu.memory_space<vmem>>, %arg8: memref<1x32xf32, #tpu.memory_space<vmem>>, %arg9: memref<32x64xf32, #tpu.memory_space<vmem>>, %arg10: memref<1x64xf32, #tpu.memory_space<vmem>>, %arg11: memref<32x32xf32, #tpu.memory_space<vmem>>, %arg12: memref<1x32xf32, #tpu.memory_space<vmem>>, %arg13: memref<1x8x32xf32, #tpu.memory_space<vmem>>) attributes {dimension_semantics = [#tpu.dimension_semantics<parallel>, #tpu.dimension_semantics<parallel>], iteration_bounds = array<i64: 2, 1>, scalar_prefetch = 0 : i64, scratch_operands = 0 : i64, tpu.core_type = #tpu.core_type<tc>, window_params = [{transform_indices = @transform_0, window_bounds = array<i64: 1, 8, 32>}, {transform_indices = @transform_1, window_bounds = array<i64: 1, 8, 32>}, {transform_indices = @transform_2, window_bounds = array<i64: 1, 8, 8>}, {pipeline_mode = #tpu.pipeline_mode<synchronous>, transform_indices = @transform_3, window_bounds = array<i64: 1, 32>}, {pipeline_mode = #tpu.pipeline_mode<synchronous>, transform_indices = @transform_4, window_bounds = array<i64: 1, 32>}, {pipeline_mode = #tpu.pipeline_mode<synchronous>, transform_indices = @transform_5, window_bounds = array<i64: 32, 32>}, {pipeline_mode = #tpu.pipeline_mode<synchronous>, transform_indices = @transform_6, window_bounds = array<i64: 1, 32>}, {pipeline_mode = #tpu.pipeline_mode<synchronous>, transform_indices = @transform_7, window_bounds = array<i64: 32, 64>}, {pipeline_mode = #tpu.pipeline_mode<synchronous>, transform_indices = @transform_8, window_bounds = array<i64: 1, 64>}, {pipeline_mode = #tpu.pipeline_mode<synchronous>, transform_indices = @transform_9, window_bounds = array<i64: 32, 32>}, {pipeline_mode = #tpu.pipeline_mode<synchronous>, transform_indices = @transform_10, window_bounds = array<i64: 1, 32>}, {transform_indices = @transform_11, window_bounds = array<i64: 1, 8, 32>}]} {
    %c0 = arith.constant 0 : index
    %c0_0 = arith.constant 0 : index
    %c0_1 = arith.constant 0 : index
    %0 = vector.load %arg2[%c0, %c0_0, %c0_1] : memref<1x8x32xf32, #tpu.memory_space<vmem>>, vector<1x8x32xf32>
    %1 = vector.shape_cast %0 : vector<1x8x32xf32> to vector<8x32xf32>
    %c0_2 = arith.constant 0 : index
    %c0_3 = arith.constant 0 : index
    %c0_4 = arith.constant 0 : index
    %2 = vector.load %arg3[%c0_2, %c0_3, %c0_4] : memref<1x8x32xf32, #tpu.memory_space<vmem>>, vector<1x8x32xf32>
    %3 = vector.shape_cast %2 : vector<1x8x32xf32> to vector<8x32xf32>
    %c0_5 = arith.constant 0 : index
    %c0_6 = arith.constant 0 : index
    %c0_7 = arith.constant 0 : index
    %4 = vector.load %arg4[%c0_5, %c0_6, %c0_7] : memref<1x8x8xf32, #tpu.memory_space<vmem>>, vector<1x8x8xf32>
    %5 = vector.shape_cast %4 : vector<1x8x8xf32> to vector<8x8xf32>
    %c0_8 = arith.constant 0 : index
    %c0_9 = arith.constant 0 : index
    %6 = vector.load %arg5[%c0_8, %c0_9] : memref<1x32xf32, #tpu.memory_space<vmem>>, vector<1x32xf32>
    %c0_10 = arith.constant 0 : index
    %c0_11 = arith.constant 0 : index
    %7 = vector.load %arg6[%c0_10, %c0_11] : memref<1x32xf32, #tpu.memory_space<vmem>>, vector<1x32xf32>
    %cst = arith.constant dense<0.000000e+00> : vector<8xf32>
    %8 = vector.multi_reduction <add>, %1, %cst [1] : vector<8x32xf32> to vector<8xf32>
    %9 = vector.shape_cast %8 : vector<8xf32> to vector<8x1xf32>
    %cst_12 = arith.constant 3.200000e+01 : f32
    %10 = vector.broadcast %cst_12 : f32 to vector<8x1xf32>
    %11 = arith.divf %9, %10 : vector<8x1xf32>
    %12 = vector.broadcast %11 : vector<8x1xf32> to vector<8x32xf32>
    %13 = arith.subf %1, %12 : vector<8x32xf32>
    %14 = arith.mulf %13, %13 : vector<8x32xf32>
    %cst_13 = arith.constant dense<0.000000e+00> : vector<8xf32>
    %15 = vector.multi_reduction <add>, %14, %cst_13 [1] : vector<8x32xf32> to vector<8xf32>
    %16 = vector.shape_cast %15 : vector<8xf32> to vector<8x1xf32>
    %cst_14 = arith.constant 0.0322580636 : f32
    %17 = vector.broadcast %cst_14 : f32 to vector<8x1xf32>
    %18 = arith.mulf %16, %17 : vector<8x1xf32>
    %19 = math.sqrt %18 : vector<8x1xf32>
    %cst_15 = arith.constant 9.99999997E-7 : f32
    %20 = vector.broadcast %cst_15 : f32 to vector<8x1xf32>
    %21 = arith.addf %19, %20 : vector<8x1xf32>
    %22 = tpu.reciprocal %21 {approx = true} : vector<8x1xf32> -> vector<8x1xf32>
    %23 = vector.broadcast %6 : vector<1x32xf32> to vector<8x32xf32>
    %24 = arith.mulf %23, %13 : vector<8x32xf32>
    %25 = vector.broadcast %22 : vector<8x1xf32> to vector<8x32xf32>
    %26 = arith.mulf %24, %25 : vector<8x32xf32>
    %27 = vector.broadcast %7 : vector<1x32xf32> to vector<8x32xf32>
    %28 = arith.addf %26, %27 : vector<8x32xf32>
    %cst_16 = arith.constant dense<0.000000e+00> : vector<8xf32>
    %29 = vector.multi_reduction <add>, %3, %cst_16 [1] : vector<8x32xf32> to vector<8xf32>
    %30 = vector.shape_cast %29 : vector<8xf32> to vector<8x1xf32>
    %cst_17 = arith.constant 3.200000e+01 : f32
    %31 = vector.broadcast %cst_17 : f32 to vector<8x1xf32>
    %32 = arith.divf %30, %31 : vector<8x1xf32>
    %33 = vector.broadcast %32 : vector<8x1xf32> to vector<8x32xf32>
    %34 = arith.subf %3, %33 : vector<8x32xf32>
    %35 = arith.mulf %34, %34 : vector<8x32xf32>
    %cst_18 = arith.constant dense<0.000000e+00> : vector<8xf32>
    %36 = vector.multi_reduction <add>, %35, %cst_18 [1] : vector<8x32xf32> to vector<8xf32>
    %37 = vector.shape_cast %36 : vector<8xf32> to vector<8x1xf32>
    %cst_19 = arith.constant 0.0322580636 : f32
    %38 = vector.broadcast %cst_19 : f32 to vector<8x1xf32>
    %39 = arith.mulf %37, %38 : vector<8x1xf32>
    %40 = math.sqrt %39 : vector<8x1xf32>
    %cst_20 = arith.constant 9.99999997E-7 : f32
    %41 = vector.broadcast %cst_20 : f32 to vector<8x1xf32>
    %42 = arith.addf %40, %41 : vector<8x1xf32>
    %43 = tpu.reciprocal %42 {approx = true} : vector<8x1xf32> -> vector<8x1xf32>
    %44 = vector.broadcast %6 : vector<1x32xf32> to vector<8x32xf32>
    %45 = arith.mulf %44, %34 : vector<8x32xf32>
    %46 = vector.broadcast %43 : vector<8x1xf32> to vector<8x32xf32>
    %47 = arith.mulf %45, %46 : vector<8x32xf32>
    %48 = vector.broadcast %7 : vector<1x32xf32> to vector<8x32xf32>
    %49 = arith.addf %47, %48 : vector<8x32xf32>
    %c0_21 = arith.constant 0 : index
    %c0_22 = arith.constant 0 : index
    %50 = vector.load %arg7[%c0_21, %c0_22] : memref<32x32xf32, #tpu.memory_space<vmem>>, vector<32x32xf32>
    %cst_23 = arith.constant dense<0.000000e+00> : vector<8x32xf32>
    %51 = tpu.matmul %28, %50, %cst_23 {dimension_numbers = #tpu.dot_dimension_numbers<[1], [0], [0], [1], [0, 0, 1, 1], [], []>} : vector<8x32xf32>, vector<32x32xf32>, vector<8x32xf32> -> vector<8x32xf32>
    %c0_24 = arith.constant 0 : index
    %c0_25 = arith.constant 0 : index
    %52 = vector.load %arg8[%c0_24, %c0_25] : memref<1x32xf32, #tpu.memory_space<vmem>>, vector<1x32xf32>
    %53 = vector.broadcast %52 : vector<1x32xf32> to vector<8x32xf32>
    %54 = arith.addf %51, %53 : vector<8x32xf32>
    %c0_26 = arith.constant 0 : index
    %c0_27 = arith.constant 0 : index
    %55 = vector.load %arg9[%c0_26, %c0_27] : memref<32x64xf32, #tpu.memory_space<vmem>>, vector<32x64xf32>
    %cst_28 = arith.constant dense<0.000000e+00> : vector<8x64xf32>
    %56 = tpu.matmul %49, %55, %cst_28 {dimension_numbers = #tpu.dot_dimension_numbers<[1], [0], [0], [1], [0, 0, 1, 1], [], []>} : vector<8x32xf32>, vector<32x64xf32>, vector<8x64xf32> -> vector<8x64xf32>
    %c0_29 = arith.constant 0 : index
    %c0_30 = arith.constant 0 : index
    %57 = vector.load %arg10[%c0_29, %c0_30] : memref<1x64xf32, #tpu.memory_space<vmem>>, vector<1x64xf32>
    %58 = vector.broadcast %57 : vector<1x64xf32> to vector<8x64xf32>
    %59 = arith.addf %56, %58 : vector<8x64xf32>
    %60 = vector.extract_strided_slice %59 {offsets = [0, 0], sizes = [8, 32], strides = [1, 1]} : vector<8x64xf32> to vector<8x32xf32>
    %61 = vector.extract_strided_slice %59 {offsets = [0, 32], sizes = [8, 32], strides = [1, 1]} : vector<8x64xf32> to vector<8x32xf32>
    %62 = vector.extract_strided_slice %54 {offsets = [0, 0], sizes = [8, 8], strides = [1, 1]} : vector<8x32xf32> to vector<8x8xf32>
    %63 = vector.extract_strided_slice %60 {offsets = [0, 0], sizes = [8, 8], strides = [1, 1]} : vector<8x32xf32> to vector<8x8xf32>
    %64 = vector.extract_strided_slice %61 {offsets = [0, 0], sizes = [8, 8], strides = [1, 1]} : vector<8x32xf32> to vector<8x8xf32>
    %cst_31 = arith.constant dense<0.000000e+00> : vector<8x8xf32>
    %65 = tpu.matmul %62, %63, %cst_31 {dimension_numbers = #tpu.dot_dimension_numbers<[1], [1], [0], [0], [0, 0, 1, 0], [], []>} : vector<8x8xf32>, vector<8x8xf32>, vector<8x8xf32> -> vector<8x8xf32>
    %cst_32 = arith.constant 0.353553385 : f32
    %66 = vector.broadcast %cst_32 : f32 to vector<8x8xf32>
    %67 = arith.mulf %65, %66 : vector<8x8xf32>
    %cst_33 = arith.constant 0.000000e+00 : f32
    %68 = vector.broadcast %cst_33 : f32 to vector<8x8xf32>
    %69 = arith.cmpf oeq, %5, %68 : vector<8x8xf32>
    %cst_34 = arith.constant -1.000000e+09 : f32
    %70 = vector.broadcast %cst_34 : f32 to vector<8x8xf32>
    %71 = arith.select %69, %70, %67 : vector<8x8xi1>, vector<8x8xf32>
    %cst_35 = arith.constant dense<0xFF800000> : vector<8xf32>
    %72 = vector.multi_reduction <maximumf>, %71, %cst_35 [1] : vector<8x8xf32> to vector<8xf32>
    %73 = vector.shape_cast %72 : vector<8xf32> to vector<8x1xf32>
    %74 = vector.broadcast %73 : vector<8x1xf32> to vector<8x8xf32>
    %75 = arith.subf %71, %74 : vector<8x8xf32>
    %76 = math.exp %75 : vector<8x8xf32>
    %cst_36 = arith.constant dense<0.000000e+00> : vector<8xf32>
    %77 = vector.multi_reduction <add>, %76, %cst_36 [1] : vector<8x8xf32> to vector<8xf32>
    %78 = vector.shape_cast %77 : vector<8xf32> to vector<8x1xf32>
    %79 = tpu.reciprocal %78 {approx = true} : vector<8x1xf32> -> vector<8x1xf32>
    %80 = vector.broadcast %79 : vector<8x1xf32> to vector<8x8xf32>
    %81 = arith.mulf %76, %80 : vector<8x8xf32>
    %cst_37 = arith.constant dense<0.000000e+00> : vector<8x8xf32>
    %82 = tpu.matmul %81, %64, %cst_37 {dimension_numbers = #tpu.dot_dimension_numbers<[1], [0], [0], [1], [0, 0, 1, 1], [], []>} : vector<8x8xf32>, vector<8x8xf32>, vector<8x8xf32> -> vector<8x8xf32>
    %83 = vector.extract_strided_slice %54 {offsets = [0, 8], sizes = [8, 8], strides = [1, 1]} : vector<8x32xf32> to vector<8x8xf32>
    %84 = vector.extract_strided_slice %60 {offsets = [0, 8], sizes = [8, 8], strides = [1, 1]} : vector<8x32xf32> to vector<8x8xf32>
    %85 = vector.extract_strided_slice %61 {offsets = [0, 8], sizes = [8, 8], strides = [1, 1]} : vector<8x32xf32> to vector<8x8xf32>
    %cst_38 = arith.constant dense<0.000000e+00> : vector<8x8xf32>
    %86 = tpu.matmul %83, %84, %cst_38 {dimension_numbers = #tpu.dot_dimension_numbers<[1], [1], [0], [0], [0, 0, 1, 0], [], []>} : vector<8x8xf32>, vector<8x8xf32>, vector<8x8xf32> -> vector<8x8xf32>
    %cst_39 = arith.constant 0.353553385 : f32
    %87 = vector.broadcast %cst_39 : f32 to vector<8x8xf32>
    %88 = arith.mulf %86, %87 : vector<8x8xf32>
    %cst_40 = arith.constant 0.000000e+00 : f32
    %89 = vector.broadcast %cst_40 : f32 to vector<8x8xf32>
    %90 = arith.cmpf oeq, %5, %89 : vector<8x8xf32>
    %cst_41 = arith.constant -1.000000e+09 : f32
    %91 = vector.broadcast %cst_41 : f32 to vector<8x8xf32>
    %92 = arith.select %90, %91, %88 : vector<8x8xi1>, vector<8x8xf32>
    %cst_42 = arith.constant dense<0xFF800000> : vector<8xf32>
    %93 = vector.multi_reduction <maximumf>, %92, %cst_42 [1] : vector<8x8xf32> to vector<8xf32>
    %94 = vector.shape_cast %93 : vector<8xf32> to vector<8x1xf32>
    %95 = vector.broadcast %94 : vector<8x1xf32> to vector<8x8xf32>
    %96 = arith.subf %92, %95 : vector<8x8xf32>
    %97 = math.exp %96 : vector<8x8xf32>
    %cst_43 = arith.constant dense<0.000000e+00> : vector<8xf32>
    %98 = vector.multi_reduction <add>, %97, %cst_43 [1] : vector<8x8xf32> to vector<8xf32>
    %99 = vector.shape_cast %98 : vector<8xf32> to vector<8x1xf32>
    %100 = tpu.reciprocal %99 {approx = true} : vector<8x1xf32> -> vector<8x1xf32>
    %101 = vector.broadcast %100 : vector<8x1xf32> to vector<8x8xf32>
    %102 = arith.mulf %97, %101 : vector<8x8xf32>
    %cst_44 = arith.constant dense<0.000000e+00> : vector<8x8xf32>
    %103 = tpu.matmul %102, %85, %cst_44 {dimension_numbers = #tpu.dot_dimension_numbers<[1], [0], [0], [1], [0, 0, 1, 1], [], []>} : vector<8x8xf32>, vector<8x8xf32>, vector<8x8xf32> -> vector<8x8xf32>
    %104 = vector.extract_strided_slice %54 {offsets = [0, 16], sizes = [8, 8], strides = [1, 1]} : vector<8x32xf32> to vector<8x8xf32>
    %105 = vector.extract_strided_slice %60 {offsets = [0, 16], sizes = [8, 8], strides = [1, 1]} : vector<8x32xf32> to vector<8x8xf32>
    %106 = vector.extract_strided_slice %61 {offsets = [0, 16], sizes = [8, 8], strides = [1, 1]} : vector<8x32xf32> to vector<8x8xf32>
    %cst_45 = arith.constant dense<0.000000e+00> : vector<8x8xf32>
    %107 = tpu.matmul %104, %105, %cst_45 {dimension_numbers = #tpu.dot_dimension_numbers<[1], [1], [0], [0], [0, 0, 1, 0], [], []>} : vector<8x8xf32>, vector<8x8xf32>, vector<8x8xf32> -> vector<8x8xf32>
    %cst_46 = arith.constant 0.353553385 : f32
    %108 = vector.broadcast %cst_46 : f32 to vector<8x8xf32>
    %109 = arith.mulf %107, %108 : vector<8x8xf32>
    %cst_47 = arith.constant 0.000000e+00 : f32
    %110 = vector.broadcast %cst_47 : f32 to vector<8x8xf32>
    %111 = arith.cmpf oeq, %5, %110 : vector<8x8xf32>
    %cst_48 = arith.constant -1.000000e+09 : f32
    %112 = vector.broadcast %cst_48 : f32 to vector<8x8xf32>
    %113 = arith.select %111, %112, %109 : vector<8x8xi1>, vector<8x8xf32>
    %cst_49 = arith.constant dense<0xFF800000> : vector<8xf32>
    %114 = vector.multi_reduction <maximumf>, %113, %cst_49 [1] : vector<8x8xf32> to vector<8xf32>
    %115 = vector.shape_cast %114 : vector<8xf32> to vector<8x1xf32>
    %116 = vector.broadcast %115 : vector<8x1xf32> to vector<8x8xf32>
    %117 = arith.subf %113, %116 : vector<8x8xf32>
    %118 = math.exp %117 : vector<8x8xf32>
    %cst_50 = arith.constant dense<0.000000e+00> : vector<8xf32>
    %119 = vector.multi_reduction <add>, %118, %cst_50 [1] : vector<8x8xf32> to vector<8xf32>
    %120 = vector.shape_cast %119 : vector<8xf32> to vector<8x1xf32>
    %121 = tpu.reciprocal %120 {approx = true} : vector<8x1xf32> -> vector<8x1xf32>
    %122 = vector.broadcast %121 : vector<8x1xf32> to vector<8x8xf32>
    %123 = arith.mulf %118, %122 : vector<8x8xf32>
    %cst_51 = arith.constant dense<0.000000e+00> : vector<8x8xf32>
    %124 = tpu.matmul %123, %106, %cst_51 {dimension_numbers = #tpu.dot_dimension_numbers<[1], [0], [0], [1], [0, 0, 1, 1], [], []>} : vector<8x8xf32>, vector<8x8xf32>, vector<8x8xf32> -> vector<8x8xf32>
    %125 = vector.extract_strided_slice %54 {offsets = [0, 24], sizes = [8, 8], strides = [1, 1]} : vector<8x32xf32> to vector<8x8xf32>
    %126 = vector.extract_strided_slice %60 {offsets = [0, 24], sizes = [8, 8], strides = [1, 1]} : vector<8x32xf32> to vector<8x8xf32>
    %127 = vector.extract_strided_slice %61 {offsets = [0, 24], sizes = [8, 8], strides = [1, 1]} : vector<8x32xf32> to vector<8x8xf32>
    %cst_52 = arith.constant dense<0.000000e+00> : vector<8x8xf32>
    %128 = tpu.matmul %125, %126, %cst_52 {dimension_numbers = #tpu.dot_dimension_numbers<[1], [1], [0], [0], [0, 0, 1, 0], [], []>} : vector<8x8xf32>, vector<8x8xf32>, vector<8x8xf32> -> vector<8x8xf32>
    %cst_53 = arith.constant 0.353553385 : f32
    %129 = vector.broadcast %cst_53 : f32 to vector<8x8xf32>
    %130 = arith.mulf %128, %129 : vector<8x8xf32>
    %cst_54 = arith.constant 0.000000e+00 : f32
    %131 = vector.broadcast %cst_54 : f32 to vector<8x8xf32>
    %132 = arith.cmpf oeq, %5, %131 : vector<8x8xf32>
    %cst_55 = arith.constant -1.000000e+09 : f32
    %133 = vector.broadcast %cst_55 : f32 to vector<8x8xf32>
    %134 = arith.select %132, %133, %130 : vector<8x8xi1>, vector<8x8xf32>
    %cst_56 = arith.constant dense<0xFF800000> : vector<8xf32>
    %135 = vector.multi_reduction <maximumf>, %134, %cst_56 [1] : vector<8x8xf32> to vector<8xf32>
    %136 = vector.shape_cast %135 : vector<8xf32> to vector<8x1xf32>
    %137 = vector.broadcast %136 : vector<8x1xf32> to vector<8x8xf32>
    %138 = arith.subf %134, %137 : vector<8x8xf32>
    %139 = math.exp %138 : vector<8x8xf32>
    %cst_57 = arith.constant dense<0.000000e+00> : vector<8xf32>
    %140 = vector.multi_reduction <add>, %139, %cst_57 [1] : vector<8x8xf32> to vector<8xf32>
    %141 = vector.shape_cast %140 : vector<8xf32> to vector<8x1xf32>
    %142 = tpu.reciprocal %141 {approx = true} : vector<8x1xf32> -> vector<8x1xf32>
    %143 = vector.broadcast %142 : vector<8x1xf32> to vector<8x8xf32>
    %144 = arith.mulf %139, %143 : vector<8x8xf32>
    %cst_58 = arith.constant dense<0.000000e+00> : vector<8x8xf32>
    %145 = tpu.matmul %144, %127, %cst_58 {dimension_numbers = #tpu.dot_dimension_numbers<[1], [0], [0], [1], [0, 0, 1, 1], [], []>} : vector<8x8xf32>, vector<8x8xf32>, vector<8x8xf32> -> vector<8x8xf32>
    %146 = tpu.concatenate %82, %103, %124, %145 in 1 : vector<8x8xf32>, vector<8x8xf32>, vector<8x8xf32>, vector<8x8xf32> -> vector<8x32xf32>
    %c0_59 = arith.constant 0 : index
    %c0_60 = arith.constant 0 : index
    %147 = vector.load %arg11[%c0_59, %c0_60] : memref<32x32xf32, #tpu.memory_space<vmem>>, vector<32x32xf32>
    %cst_61 = arith.constant dense<0.000000e+00> : vector<8x32xf32>
    %148 = tpu.matmul %146, %147, %cst_61 {dimension_numbers = #tpu.dot_dimension_numbers<[1], [0], [0], [1], [0, 0, 1, 1], [], []>} : vector<8x32xf32>, vector<32x32xf32>, vector<8x32xf32> -> vector<8x32xf32>
    %c0_62 = arith.constant 0 : index
    %c0_63 = arith.constant 0 : index
    %149 = vector.load %arg12[%c0_62, %c0_63] : memref<1x32xf32, #tpu.memory_space<vmem>>, vector<1x32xf32>
    %150 = vector.broadcast %149 : vector<1x32xf32> to vector<8x32xf32>
    %151 = arith.addf %148, %150 : vector<8x32xf32>
    %152 = arith.addf %1, %151 : vector<8x32xf32>
    %c0_64 = arith.constant 0 : index
    %c0_65 = arith.constant 0 : index
    %c0_66 = arith.constant 0 : index
    %153 = vector.load %arg13[%c0_64, %c0_65, %c0_66] : memref<1x8x32xf32, #tpu.memory_space<vmem>>, vector<1x8x32xf32>
    %154 = vector.shape_cast %153 : vector<1x8x32xf32> to vector<8x32xf32>
    %155 = vector.shape_cast %152 : vector<8x32xf32> to vector<1x8x32xf32>
    tpu.vector_store %arg13[%c0_64, %c0_65, %c0_66], %155 {strides = array<i32>} : memref<1x8x32xf32, #tpu.memory_space<vmem>>, vector<1x8x32xf32>,
    return
  }
  func.func @transform_0(%arg0: i32, %arg1: i32) -> (i32, i32, i32) {
    %c0_i32 = arith.constant 0 : i32
    %c0_i32_0 = arith.constant 0 : i32
    return %arg0, %arg1, %c0_i32 : i32, i32, i32
  }
  func.func @transform_1(%arg0: i32, %arg1: i32) -> (i32, i32, i32) {
    %c0_i32 = arith.constant 0 : i32
    %c0_i32_0 = arith.constant 0 : i32
    %c0_i32_1 = arith.constant 0 : i32
    return %arg0, %c0_i32, %c0_i32_0 : i32, i32, i32
  }
  func.func @transform_2(%arg0: i32, %arg1: i32) -> (i32, i32, i32) {
    %c0_i32 = arith.constant 0 : i32
    %c0_i32_0 = arith.constant 0 : i32
    return %arg0, %arg1, %c0_i32 : i32, i32, i32
  }
  func.func @transform_3(%arg0: i32, %arg1: i32) -> (i32, i32) {
    %c0_i32 = arith.constant 0 : i32
    %c0_i32_0 = arith.constant 0 : i32
    %c0_i32_1 = arith.constant 0 : i32
    return %c0_i32, %c0_i32_0 : i32, i32
  }
  func.func @transform_4(%arg0: i32, %arg1: i32) -> (i32, i32) {
    %c0_i32 = arith.constant 0 : i32
    %c0_i32_0 = arith.constant 0 : i32
    %c0_i32_1 = arith.constant 0 : i32
    return %c0_i32, %c0_i32_0 : i32, i32
  }
  func.func @transform_5(%arg0: i32, %arg1: i32) -> (i32, i32) {
    %c0_i32 = arith.constant 0 : i32
    %c0_i32_0 = arith.constant 0 : i32
    %c0_i32_1 = arith.constant 0 : i32
    return %c0_i32, %c0_i32_0 : i32, i32
  }
  func.func @transform_6(%arg0: i32, %arg1: i32) -> (i32, i32) {
    %c0_i32 = arith.constant 0 : i32
    %c0_i32_0 = arith.constant 0 : i32
    %c0_i32_1 = arith.constant 0 : i32
    return %c0_i32, %c0_i32_0 : i32, i32
  }
  func.func @transform_7(%arg0: i32, %arg1: i32) -> (i32, i32) {
    %c0_i32 = arith.constant 0 : i32
    %c0_i32_0 = arith.constant 0 : i32
    %c0_i32_1 = arith.constant 0 : i32
    return %c0_i32, %c0_i32_0 : i32, i32
  }
  func.func @transform_8(%arg0: i32, %arg1: i32) -> (i32, i32) {
    %c0_i32 = arith.constant 0 : i32
    %c0_i32_0 = arith.constant 0 : i32
    %c0_i32_1 = arith.constant 0 : i32
    return %c0_i32, %c0_i32_0 : i32, i32
  }
  func.func @transform_9(%arg0: i32, %arg1: i32) -> (i32, i32) {
    %c0_i32 = arith.constant 0 : i32
    %c0_i32_0 = arith.constant 0 : i32
    %c0_i32_1 = arith.constant 0 : i32
    return %c0_i32, %c0_i32_0 : i32, i32
  }
  func.func @transform_10(%arg0: i32, %arg1: i32) -> (i32, i32) {
    %c0_i32 = arith.constant 0 : i32
    %c0_i32_0 = arith.constant 0 : i32
    %c0_i32_1 = arith.constant 0 : i32
    return %c0_i32, %c0_i32_0 : i32, i32
  }
  func.func @transform_11(%arg0: i32, %arg1: i32) -> (i32, i32, i32) {
    %c0_i32 = arith.constant 0 : i32
    %c0_i32_0 = arith.constant 0 : i32
    return %arg0, %arg1, %c0_i32 : i32, i32, i32
  }
}

</mosaic_0001>

<bundles_post_ra>
// kernel: tpu_custom_call.1
= control target key start
LH: loop header
LB: loop body
LE: loop exit
PB: predicated region body
PF: predicated region fallthrough
CT: control target
= control target key end

     0   :  { %s2689_s0 = inlined_call_operand.hbm [shape: f32[2,8,32], index: 0, kind: input, shape index: {}]   ;;  %s2690_s1 = inlined_call_operand.hbm [shape: f32[2,8,32], index: 1, kind: input, shape index: {}]   ;;  %s2691_s2 = inlined_call_operand.hbm [shape: f32[2,8,8], index: 2, kind: input, shape index: {}]   ;;  %s2692_s3 = inlined_call_operand.vmem [shape: f32[1,32], index: 3, kind: input, shape index: {}]   ;;  %s2693_s4 = inlined_call_operand.vmem [shape: f32[1,32], index: 4, kind: input, shape index: {}]   ;;  %s2694_s5 = inlined_call_operand.hbm [shape: f32[32,32], index: 5, kind: input, shape index: {}]   ;;  %s2695_s6 = inlined_call_operand.vmem [shape: f32[1,32], index: 6, kind: input, shape index: {}]   ;;  %s2696_s7 = inlined_call_operand.hbm [shape: f32[32,64], index: 7, kind: input, shape index: {}]   ;;  %s2697_s8 = inlined_call_operand.vmem [shape: f32[1,64], index: 8, kind: input, shape index: {}]   ;;  %s2698_s9 = inlined_call_operand.hbm [shape: f32[32,32], index: 9, kind: input, shape index: {}]   ;;  %s2699_s10 = inlined_call_operand.vmem [shape: f32[1,32], index: 10, kind: input, shape index: {}]   ;;  %s2700_s11 = inlined_call_operand.hbm [shape: f32[2,8,32], index: 11, kind: output, shape index: {}]  }
   0x1   :  { %2721 = sst [smem:[#allocation26_spill]] %s2690_s1 }
   0x2   :  { %2722 = sst [smem:[#allocation27_spill]] %s2694_s5 }
   0x3   :  { %2723 = sst [smem:[#allocation28_spill]] %s2696_s7 }
   0x4   :  { %2724 = sst [smem:[#allocation29_spill]] %s2699_s10 }
   0x5   :  { %2725 = sst [smem:[#allocation30_spill]] %s2700_s11 }
   0x6   :  { %16 = vsyncpa [#allocation3], 0 }
   0x7   :  { %18 = vsyncpa [#allocation3 + $0x1], 0 }
   0x8   :  { %19 = vsyncpa [#allocation6], 0 }
   0x9   :  { %21 = vsyncpa [#allocation6 + $0x1], 0 }
   0xa   :  { %22 = vsyncpa [#allocation9], 0 }
   0xb   :  { %23 = vsyncpa [#allocation12], 0 }
   0xc   :  { %24 = vsyncpa [#allocation4], 0 }
   0xd   :  { %26 = vsyncpa [#allocation4 + $0x1], 0  ;;  %s2334_s17 = smov 0   ;;  %s2336_s18 = smov 0  }
   0xe   :  { %s2338_s19 = smov 0   ;;  %s2340_s20 = smov 0  }
   0xf   :  { %s2342_s21 = smov 0   ;;  %s2344_s22 = smov 0  }
  0x10 LB: > { %2726 = sst [smem:[#allocation19_spill]] %s2231_s17  ;;  %s2365_s23 = sadd.s32 4294967295, %s2251_s22   ;;  %s2251_s22 = sphi %s2344_s22, %s32_s22   ;;  %s2247_s21 = sphi %s2342_s21, %s2767_s21   ;;  %s2243_s20 = sphi %s2340_s20, %s2766_s20   ;;  %s2239_s19 = sphi %s2338_s19, %s2770_s19   ;;  %s2235_s18 = sphi %s2336_s18, %s2769_s18   ;;  %s2231_s17 = sphi %s2334_s17, %s2768_s17  }
  0x11   : > { %2727 = sst [smem:[#allocation20_spill]] %s2247_s21  ;;  %s1708_s24 = sadd.s32 4294967294, %s2251_s22  }
  0x12   : > { %2728 = sst [smem:[#allocation21_spill]] %s2251_s22  ;;  %p66_p0 = scmp.ne.s32.totalorder %s2235_s18, %s2231_s17 }
  0x13   : > { %p2715_p1 = scmp.eq.s32.totalorder %s2365_s23, 0  ;;  %p320_p3 = scmp.eq.s32.totalorder %s1708_s24, 1 }
  0x14   : > { %p1709_p5 = scmp.ge.s32.totalorder %s2251_s22, 1  ;;  %p327_p7 = scmp.lt.s32.totalorder %s2251_s22, 3 }
  0x15   : > { %p2374_p4 = por %p2715_p1, %p66_p0  ;;  %p2379_p6 = por %p320_p3, %p66_p0 }
  0x16   : > { %p2384_p8 = pnand %p1709_p5, %p327_p7  ;;  %s2253_s28 = smov [#allocation8]  }
  0x17   : > { %s2729_s25 = scalar_select %p2374_p4, 1, 0 }
  0x18   : > { %s2730_s26 = scalar_select %p2379_p6, 1, 0 }
  0x19   : > { %s2732_s27 = scalar_select %p2384_p8, 1, 0 }
  0x1a   : > { %2731 = sst [smem:[#allocation22_spill]] %s2730_s26  ;;  %s345_s29 = sshll.u32 %s2253_s28, 4  ;;  %s346_s29 = int_to_ptr.vmem [resolvable:$true] %s345_s29 }
  0x1b   : > { %p1876_p9 = pneg %p2384_p8  ;;  %s44_s12 = sadd.s32 1, %s2247_s21 }
  0x1c   : > { %s2008_s13 = scalar_lea.vmem %s346_s29, 512  ;;  %p2016_p5 = scmp.lt.s32.totalorder %s346_s29, %s346_s29 }
  0x1d   : > { %p2393_p11 = pnand %p1876_p9, %p2715_p1  ;;  %p2009_p13 = scmp.ne.s32.totalorder %s346_s29, %s2008_s13 }
  0x1e   : > { %p2017_p7 = scmp.lt.s32.totalorder %s2008_s13, %s2008_s13 }
  0x1f   : > { %p2716_p12 = pneg %p2393_p11 }
  0x20   : > { %p2018_p2 = por %p2017_p7, %p2016_p5 }
  0x21   : > { %p2011_p0 = pnand %p2009_p13, %p2716_p12 }
  0x23   : > { %p2012_p3 = pneg %p2011_p0 }
  0x25   : > { %p2019_p10 = pnand %p2018_p2, %p2012_p3 }
  0x27   : > { %2022 = shalt.err (!%p2019_p10)
}
  0x28   : > { %s2703_s14 = smov 128   ;;  %s2705_s15 = smov 8  }
  0x29   : > { %s2734_s5 = sld [smem:[#allocation27_spill]]  ;;  %p46_p2 = scmp.ge.s32.totalorder %s44_s12, 2 }
  0x2a   : > { %s53_s28 = sadd.s32 1, %s2239_s19  ;;  %p60_p9 = scmp.ne.s32.totalorder %s2239_s19, %s2235_s18 }
  0x2b   : > { %p61_p10 = scmp.eq.s32.totalorder %s2251_s22, 0  ;;  %s2772_s12 = smov (%p46_p2, %s44_s12), 0 }
  0x2c   : > { %2735 = sst [smem:[#allocation23_spill]] %s2772_s12  ;;  %p2736_p0 = scmp.eq.s32.totalorder %s2365_s23, 1 }
  0x2d   : > { %p62_p13 = por %p61_p10, %p60_p9  ;;  %s48_s26 = ssub.s32 %s2247_s21, %s2772_s12 }
  0x2e   : > { %p2419_p3 = por %p2736_p0, %p60_p9  ;;  %p1903_p5 = scmp.lt.s32.totalorder %s2251_s22, 2 }
  0x2f   : > { %1879 = dma.hbm_to_vmem [thread:$0]  (!%p2393_p11), %s2734_s5, 512, %s346_s29, [#allocation9], %s2703_s14, %s2703_s14, %s2705_s15  }
  0x30   : > { %s2737_s13 = scalar_select %p2419_p3, 1, 0 }
  0x31   : > { %p51_p7 = scmp.eq.s32.totalorder %s48_s26, 0  ;;  %s2709_s17 = sand.u32 1, %s2239_s19  }
  0x32   : > { %2738 = sst [smem:[#allocation24_spill]] %s2737_s13  ;;  %s2429_s29 = sshll.u32 %s2709_s17, 3 }
  0x33   : > { %s2432_s16 = sshll.u32 %s2247_s21, 7  ;;  %p2437_p2 = pnand %p1903_p5, %p62_p13 }
  0x34   : > { %s2435_s24 = scalar_select %p51_p7, %s2239_s19, %s53_s28  }
  0x35   : > { %s413_s15 = sand.u32 1, %s2251_s22   ;;  %s2741_s1 = sld [smem:[#allocation26_spill]] }
  0x36   : > { %2739 = sst [smem:[#allocation25_spill]] %s2435_s24  ;;  %s417_s11 = scalar_lea.vmem [#allocation5], %s2429_s29 }
  0x37   : > { %s424_s17 = sshll.u32 %s417_s11, 4  ;;  %s2256_s10 = smov [#allocation10]   ;;  %s425_s17 = int_to_ptr.vmem [resolvable:$true] %s424_s17 }
  0x38   : > { %s361_s21 = sshll.u32 %s2256_s10, 4  ;;  %s2447_s13 = scalar_lea.sflag [#allocation6], %s413_s15  ;;  %s362_s21 = int_to_ptr.vmem [resolvable:$true] %s361_s21 }
  0x39   : > { %p2717_p9 = pneg %p2437_p2  ;;  %s2036_s28 = scalar_lea.vmem %s425_s17, 128 }
  0x3a   : > { %p2037_p10 = scmp.ne.s32.totalorder %s425_s17, %s2036_s28  ;;  %s2257_s24 = smov [#allocation5]  }
  0x3b   : > { %s422_s26 = scalar_lea.hbm %s2741_s1, %s2432_s16  ;;  %s2041_s22 = sshll.u32 %s2257_s24, 4  ;;  %s2042_s22 = int_to_ptr.vmem [resolvable:$false] %s2041_s22 }
  0x3c   : > { %p2039_p13 = pnand %p2037_p10, %p2717_p9  ;;  %s2043_s5 = scalar_lea.vmem %s2042_s22, 256 }
  0x3d   : > { %p2044_p5 = scmp.lt.s32.totalorder %s425_s17, %s2042_s22  ;;  %p2045_p7 = scmp.lt.s32.totalorder %s2043_s5, %s2036_s28 }
  0x3e   : > { %p2040_p0 = pneg %p2039_p13 }
  0x3f   : > { %p2046_p1 = por %p2045_p7, %p2044_p5 }
  0x41   : > { %p2047_p12 = pnand %p2046_p1, %p2040_p0 }
  0x43   : > { %2050 = shalt.err (!%p2047_p12)
}
  0x44   : > { %1892 = dma.hbm_to_vmem [thread:$0]  (!%p2437_p2), %s422_s26, 128, %s425_s17, %s2447_s13  }
  0x45   : > { %s2062_s10 = scalar_lea.vmem %s362_s21, 512  ;;  %p2742_p10 = pneg %p2393_p11 }
  0x46   : > { %p2063_p6 = scmp.ne.s32.totalorder %s362_s21, %s2062_s10  ;;  %p2070_p3 = scmp.lt.s32.totalorder %s362_s21, %s362_s21 }
  0x47   : > { %p2071_p4 = scmp.lt.s32.totalorder %s2062_s10, %s2062_s10 }
  0x48   : > { %p2065_p13 = pnand %p2063_p6, %p2742_p10 }
  0x49   : > { %p2072_p8 = por %p2071_p4, %p2070_p3 }
  0x4a   : > { %p2066_p9 = pneg %p2065_p13 }
  0x4c   : > { %p2073_p5 = pnand %p2072_p8, %p2066_p9 }
  0x4e   : > { %2076 = shalt.err (!%p2073_p5)
}
  0x4f   : > { %s2743_s11 = smov 8   ;;  %s2744_s22 = smov 128  }
  0x50   : > { %s2745_s7 = sld [smem:[#allocation28_spill]]  ;;  %s2258_s17 = smov [#allocation11]  }
  0x51   : > { %s377_s24 = sshll.u32 %s2258_s17, 4  ;;  %p2746_p6 = pmov %p2742_p10  ;;  %s378_s24 = int_to_ptr.vmem [resolvable:$true] %s377_s24 }
  0x52   : > { %s2088_s26 = scalar_lea.vmem %s378_s24, 512  ;;  %p2096_p12 = scmp.lt.s32.totalorder %s378_s24, %s378_s24 }
  0x53   : > { %p2089_p1 = scmp.ne.s32.totalorder %s378_s24, %s2088_s26  ;;  %p2097_p3 = scmp.lt.s32.totalorder %s2088_s26, %s2088_s26 }
  0x55   : > { %p2091_p4 = pnand %p2089_p1, %p2746_p6  ;;  %p2098_p9 = por %p2097_p3, %p2096_p12 }
  0x56   : > { %1882 = dma.hbm_to_vmem [thread:$0]  (!%p2393_p11), %s2745_s7, 512, %s362_s21, [#allocation9], %s2744_s22, %s2744_s22, %s2743_s11  }
  0x57   : > { %p2092_p8 = pneg %p2091_p4 }
  0x59   : > { %p2099_p0 = pnand %p2098_p9, %p2092_p8 }
  0x5b   : > { %2102 = shalt.err (!%p2099_p0)
}
  0x5c   : > { %1885 = dma.hbm_to_vmem [thread:$0]  (!%p2393_p11), %s2698_s9, 512, %s378_s24, [#allocation12], %s2744_s22, %s2744_s22, %s2743_s11  }
  0x5d   : > { %s404_s12 = scalar_lea.hbm %s2689_s0, %s2432_s16  ;;  %s398_s15 = scalar_lea.vmem [#allocation2], %s2429_s29 }
  0x5e   : > { %s406_s17 = sshll.u32 %s398_s15, 4  ;;  %s2747_s26 = sand.u32 1, %s2239_s19   ;;  %s407_s17 = int_to_ptr.vmem [resolvable:$true] %s406_s17 }
  0x5f   : > { %s395_s30 = scalar_lea.sflag [#allocation3], %s2747_s26  ;;  %s2116_s1 = scalar_lea.vmem %s407_s17, 128 }
  0x60   : > { %p2117_p7 = scmp.ne.s32.totalorder %s407_s17, %s2116_s1  ;;  %p2748_p10 = pneg %p2437_p2 }
  0x61   : > { %s2259_s21 = smov [#allocation2]  }
  0x62   : > { %p2119_p13 = pnand %p2117_p7, %p2748_p10  ;;  %s2121_s28 = sshll.u32 %s2259_s21, 4  ;;  %s2122_s28 = int_to_ptr.vmem [resolvable:$false] %s2121_s28 }
  0x63   : > { %s2123_s7 = scalar_lea.vmem %s2122_s28, 256  ;;  %p2124_p11 = scmp.lt.s32.totalorder %s407_s17, %s2122_s28 }
  0x64   : > { %p2120_p5 = pneg %p2119_p13  ;;  %p2125_p1 = scmp.lt.s32.totalorder %s2123_s7, %s2116_s1 }
  0x66   : > { %p2126_p6 = por %p2125_p1, %p2124_p11 }
  0x68   : > { %p2127_p4 = pnand %p2126_p6, %p2120_p5 }
  0x6a   : > { %2130 = shalt.err (!%p2127_p4)
}
  0x6b   : > { %1889 = dma.hbm_to_vmem [thread:$0]  (!%p2437_p2), %s404_s12, 128, %s407_s17, %s395_s30  }
  0x6c   : > { %s441_s24 = scalar_lea.hbm %s2691_s2, %s2432_s16  ;;  %s435_s5 = scalar_lea.vmem [#allocation7], %s2429_s29 }
  0x6d   : > { %s443_s10 = sshll.u32 %s435_s5, 4  ;;  %p2749_p12 = pmov %p2748_p10  ;;  %s444_s10 = int_to_ptr.vmem [resolvable:$true] %s443_s10 }
  0x6e   : > { %s2144_s15 = scalar_lea.vmem %s444_s10, 128  ;;  %s2260_s1 = smov [#allocation7]  }
  0x6f   : > { %p2145_p8 = scmp.ne.s32.totalorder %s444_s10, %s2144_s15  ;;  %s2149_s7 = sshll.u32 %s2260_s1, 4  ;;  %s2150_s7 = int_to_ptr.vmem [resolvable:$false] %s2149_s7 }
  0x70   : > { %s2151_s26 = scalar_lea.vmem %s2150_s7, 256  ;;  %p2152_p0 = scmp.lt.s32.totalorder %s444_s10, %s2150_s7 }
  0x71   : > { %p2147_p3 = pnand %p2145_p8, %p2749_p12  ;;  %p2153_p7 = scmp.lt.s32.totalorder %s2151_s26, %s2144_s15 }
  0x73   : > { %p2148_p9 = pneg %p2147_p3  ;;  %p2154_p10 = por %p2153_p7, %p2152_p0 }
  0x75   : > { %p2155_p13 = pnand %p2154_p10, %p2148_p9 }
  0x77   : > { %2158 = shalt.err (!%p2155_p13)
}
  0x78   : > { %1895 = dma.hbm_to_vmem [thread:$0]  (!%p2437_p2), %s441_s24, 128, %s444_s10, %s2447_s13  }
  0x79   : > { %p2750_p5 = scmp.ne.s32.totalorder %s2732_s27, 0 }
  0x7a   : > { %s2505_s29 = sand.u32 (!%p2750_p5), 1, %s2235_s18   ;;  %p2751_p11 = scmp.ne.s32.totalorder (!%p2750_p5), %s2729_s25, 0 }
  0x7b   : > { %452 = sbr.rel (%p2750_p5) target bundleno = 1862 (0x746), region = 64  ;;  %s2508_s16 = sshll.u32 (!%p2750_p5), %s2505_s29, 3 }
  0x7c   : > { %s455_s12 = scalar_lea.sflag (!%p2750_p5), [#allocation3], %s2505_s29  ;;  %s458_s17 = scalar_lea.vmem (!%p2750_p5), [#allocation2], %s2508_s16 }
  0x80   : > { %2210 = dma.done.wait (%p2751_p11), %s455_s12, 128  }
  0x81   : > { %2212 = vsyncadd (%p2751_p11), %s455_s12, 4294967168  ;;  %s463_s27 = sand.u32 1, %s2365_s23   ;;  %s467_s13 = scalar_lea.vmem [#allocation5], %s2508_s16 }
  0x82   : > { %s464_s14 = scalar_lea.sflag [#allocation6], %s463_s27 }
  0x83   : > { %2214 = dma.done.wait (%p2751_p11), %s464_s14, 256  }
  0x84   : > { %2216 = vsyncadd (%p2751_p11), %s464_s14, 4294967040  ;;  %s476_s30 = scalar_lea.vmem [#allocation7], %s2508_s16  ;;  %p2752_p2 = scmp.eq.s32.totalorder %s2365_s23, 0 }
  0x86   : > { %2218 = dma.done.wait (%p2752_p2), [#allocation9], 1024   ;;  %p2753_p1 = pmov %p2752_p2 }
  0x88   : > { %2220 = vsyncadd (%p2753_p1), [#allocation9], 4294966272  ;;  %p2754_p6 = pmov %p2753_p1 }
  0x89   : > { %p2755_p4 = pmov %p2753_p1 }
  0x8a   : > { %2222 = dma.done.wait (%p2754_p6), [#allocation12], 512  }
  0x8b   : > { %2224 = vsyncadd (%p2755_p4), [#allocation12], 4294966784  ;;  %vm542_vm0 = vcmask 261120   ;;  %v538_v0 = vld [vmem:[%s467_s13] sm:$0xff]  ;;  %v2531_v1 = vld [vmem:[%s458_s17] sm:$0xff]  ;;  %v2261_v16 = vmov 0.0  }
  0x8c   : > { %v578_v2 = vsel %vm542_vm0, %v538_v0, 0.0  ;;  %v543_v3 = vsel %vm542_vm0, %v2531_v1, 0.0  ;;  %v687_v14 = vld [vmem:[#allocation10 + $0x18] sm:$0xff]  ;;  %1794 = vmatprep.subr.mxu1 %v2261_v16  ;;  %v686_v17 = vld [vmem:[#allocation10 + $0x10] sm:$0xff]  ;;  %1783 = vmatprep.subr.mxu0 %v2261_v16  ;;  %v685_v19 = vld [vmem:[#allocation10 + $0x8] sm:$0xff]  ;;  %vm2262_vm1 = vmmov 0  }
  0x8d   : > { %579 = vadd.xlane.f32.xlu0 %v578_v2  ;;  %v603_v15 = vld [vmem:[#allocation8 + $0x18] sm:$0xff]  ;;  %v602_v18 = vld [vmem:[#allocation8 + $0x10] sm:$0xff]  ;;  %1795 = vmatpush3.msra.mxu1 %v687_v14  ;;  %v684_v20 = vld [vmem:[#allocation10] sm:$0xff]  ;;  %vm768_vm6 = vcmask 64512   ;;  %s2263_s10 = smov 120   ;;  %s2264_s15 = smov 104  }
  0x8e   : > { %1784 = vmatpush3.msra.mxu0 %v603_v15  ;;  %1796 = vmatprep.subr.mxu1 %v2261_v16  ;;  %v601_v21 = vld [vmem:[#allocation8 + $0x8] sm:$0xff]  ;;  %v600_v22 = vld [vmem:[#allocation8] sm:$0xff]  ;;  %v1728_v39 = vld [vmem:[%s2692_s3] ss:$0 sm:$0xff]  ;;  %s2265_s1 = smov 112   ;;  %s2266_s7 = smov 88  }
  0x8f   : > { %1785 = vmatprep.subr.mxu0 %v2261_v16  ;;  %1797 = vmatpush3.msra.mxu1 %v686_v17  ;;  %v1729_v42 = vld [vmem:[%s2693_s4] ss:$0 sm:$0xff]  ;;  %s2267_s26 = smov 80   ;;  %s2268_s12 = smov 96   ;;  %vm1449_vm8 = vcmask 130048   ;;  %vm1451_vm9 = vcmask 195584  }
  0x90   : > { %1786 = vmatpush3.msra.mxu0 %v602_v18  ;;  %1798 = vmatprep.subr.mxu1 %v2261_v16  ;;  %v1732_v49 = vld [vmem:[%s2697_s8] ss:$0 sm:$0xff]  ;;  %s2269_s17 = smov 72   ;;  %s2270_s27 = smov 8  }
  0x91   : > { %544 = vadd.xlane.f32.xlu0 %v543_v3  ;;  %1802 = vmatprep.mubr.msk.f32.mxu1 %vm2262_vm1, %v2261_v16  ;;  %v1730_v53 = vld [vmem:[%s2695_s6] ss:$0 sm:$0xff]  ;;  %s2271_s14 = smov 16   ;;  %s2272_s13 = smov 24  }
  0x92   : > { %1799 = vmatpush3.msra.mxu1 %v685_v19  ;;  %1787 = vmatprep.subr.mxu0 %v2261_v16  ;;  %v539_v63 = vld [vmem:[%s476_s30] sm:$0xff]  ;;  %s2756_s30 = sld [smem:[#allocation24_spill]]  ;;  %s1749_s28 = sshll.u32 %s2243_s20, 7 }
  0x93   : > { %1800 = vmatprep.subr.mxu1 %v2261_v16  ;;  %1791 = vmatprep.mubr.msk.f32.mxu0 %vm2262_vm1, %v2261_v16  ;;  %vm846_vm7 = vcmp.eq.f32.partialorder %v539_v63, 0.0  ;;  %s2757_s21 = sld [smem:[#allocation29_spill]]  ;;  %s536_s11 = scalar_lea.vmem [#allocation13], %s2508_s16 }
  0x94   : > { %1801 = vmatpush3.msra.mxu1 %v684_v20  ;;  %1788 = vmatpush3.msra.mxu0 %v601_v21  ;;  %s1554_s22 = sshll.u32 %s536_s11, 4  ;;  %s2273_s20 = smov [#allocation13]   ;;  %s1555_s22 = int_to_ptr.vmem [resolvable:$true] %s1554_s22 }
  0x95   : > { %1805 = vmatprep.subr.mxu1 %v2261_v16  ;;  %1789 = vmatprep.subr.mxu0 %v2261_v16  ;;  %s2163_s16 = sshll.u32 %s2273_s20, 4  ;;  %s2164_s16 = int_to_ptr.vmem [resolvable:$false] %s2163_s16 }
  0x96   : > { %1790 = vmatpush3.msra.mxu0 %v600_v22  ;;  %p2166_p0 = scmp.lt.s32.totalorder %s1555_s22, %s2164_s16 }
  0x97   : > { %1815 = vmatprep.subr.mxu0 %v2261_v16 }
  0x98   : > { %p2759_p12 = scmp.ne.s32.totalorder %s2756_s30, 0 }
 0x116   : > { %v580_v4 = vpop.xlane.xlu0 %579 }
 0x117   : > { %v581_v5 = vmul.f32 0.03125, %v580_v4 }
 0x119   : > { %v2536_v6 = vsub.f32 %v538_v0, %v581_v5 }
 0x11a   : > { %v545_v7 = vpop.xlane.xlu0 %544 }
 0x11b   : > { %v547_v8 = vmul.f32 0.03125, %v545_v7  ;;  %v583_v9 = vmul.f32 %v2536_v6, %v2536_v6  ;;  %v597_v40 = vmul.f32 %v1728_v39, %v2536_v6 }
 0x11d   : > { %v2541_v10 = vsub.f32 %v2531_v1, %v547_v8  ;;  %v584_v11 = vsel %vm542_vm0, %v583_v9, 0.0 }
 0x11e   : > { %585 = vadd.xlane.f32.xlu1 %v584_v11 }
 0x11f   : > { %v549_v12 = vmul.f32 %v2541_v10, %v2541_v10  ;;  %v569_v44 = vmul.f32 %v1728_v39, %v2541_v10 }
 0x121   : > { %v550_v13 = vsel %vm542_vm0, %v549_v12, 0.0 }
 0x122   : > { %551 = vadd.xlane.f32.xlu1 %v550_v13 }
 0x1a7   : > { %v586_v23 = vpop.xlane.xlu1 %585 }
 0x1a8   : > { %v587_v24 = vmul.f32 0.032258064, %v586_v23 }
 0x1aa   : > { %1973 = vrsqrt.f32 %v587_v24  ;;  %vm590_vm2 = vcmp.eq.f32.partialorder %v587_v24, inf  ;;  %v593_v29 = vand.u32 2147483648, %v587_v24  ;;  %vm592_vm3 = vcmp.eq.f32.partialorder %v587_v24, 0.0 }
 0x1ab   : > { %v552_v25 = vpop.xlane.xlu1 %551 }
 0x1ac   : > { %v553_v26 = vmul.f32 0.032258064, %v552_v25 }
 0x1ae   : > { %1975 = vrsqrt.f32 %v553_v26  ;;  %vm556_vm4 = vcmp.eq.f32.partialorder %v553_v26, inf  ;;  %v559_v35 = vand.u32 2147483648, %v553_v26  ;;  %vm558_vm5 = vcmp.eq.f32.partialorder %v553_v26, 0.0 }
 0x1b7   : > { %v1974_v27 = vpop.eup %1973 }
 0x1b8   : > { %v589_v28 = vmul.f32 %v1974_v27, %v587_v24 }
 0x1ba   : > { %v591_v30 = vsel %vm590_vm2, %v587_v24, %v589_v28 }
 0x1bb   : > { %v1976_v31 = vpop.eup %1975  ;;  %v594_v32 = vsel %vm592_vm3, %v593_v29, %v591_v30 }
 0x1bc   : > { %v595_v33 = vadd.f32 1e-06, %v594_v32  ;;  %v555_v34 = vmul.f32 %v1976_v31, %v553_v26 }
 0x1be   : > { %1977 = vrcp.f32 %v595_v33  ;;  %v557_v36 = vsel %vm556_vm4, %v553_v26, %v555_v34 }
 0x1bf   : > { %v560_v37 = vsel %vm558_vm5, %v559_v35, %v557_v36 }
 0x1c0   : > { %v561_v38 = vadd.f32 1e-06, %v560_v37 }
 0x1c2   : > { %1979 = vrcp.f32 %v561_v38 }
 0x1cb   : > { %v1978_v41 = vpop.eup %1977 }
 0x1cc   : > { %v598_v43 = vmul.f32 %v1978_v41, %v597_v40 }
 0x1ce   : > { %v599_v45 = vadd.f32 %v1729_v42, %v598_v43 }
 0x1cf   : > { %v1980_v46 = vpop.eup %1979 }
 0x1d0   : > { %1803 = vmatmul.mubr.msk.f32.vlgmr.msra.gmra.mxu1 %vm542_vm0, %v599_v45  ;;  %v570_v47 = vmul.f32 %v1980_v46, %v569_v44 }
 0x1d1   : > { %1807 = vmatprep.mubr.msk.f32.mxu1 %vm2262_vm1, %v2261_v16 }
 0x1d2   : > { %v577_v48 = vadd.f32 %v1729_v42, %v570_v47 }
 0x1d4   : > { %1792 = vmatmul.mubr.msk.f32.vlgmr.msra.gmra.mxu0 %vm542_vm0, %v577_v48 }
 0x1d5   : > { %1817 = vmatprep.mubr.msk.f32.mxu0 %vm2262_vm1, %v2261_v16 }
 0x290   : > { %v764_v50 = vpop.f32.mrf.mxu1 }
 0x291   : > { %v2578_v51 = vadd.f32 %v1732_v49, %v764_v50 }
 0x292   : > { %v1804_v52 = vpop.f32.mrf.mxu1 }
 0x293   : > { %1806 = vmatpush3.xpose.msk.msra.mxu1 %vm768_vm6, %v2578_v51  ;;  %937 = vrot.lane.b32.xlu0 %v2578_v51, %s2263_s10 }
 0x294   : > { %v680_v54 = vpop.f32.mrf.mxu0  ;;  %1810 = vmatprep.subr.mxu1 %v2261_v16 }
 0x295   : > { %v681_v55 = vadd.f32 %v1730_v53, %v680_v54 }
 0x296   : > { %v1793_v56 = vpop.f32.mrf.mxu0 }
 0x297   : > { %1271 = vrot.lane.b32.xlu0 %v2578_v51, %s2264_s15  ;;  %935 = vrot.lane.b32.xlu1 %v681_v55, %s2263_s10  ;;  %s2758_s10 = sld [smem:[#allocation30_spill]] }
 0x298   : > { %1808 = vmatmul.mubr.msk.f32.vlgmr.msra.gmra.mxu1 %vm768_vm6, %v681_v55 }
 0x299   : > { %1812 = vmatprep.mubr.msk.f32.mxu1 %vm2262_vm1, %v2261_v16 }
 0x29b   : > { %1104 = vrot.lane.b32.xlu1 %v2578_v51, %s2265_s1 }
 0x29f   : > { %1102 = vrot.lane.b32.xlu1 %v681_v55, %s2265_s1  ;;  %s1540_s1 = scalar_lea.sflag [#allocation4], %s2505_s29 }
 0x2a3   : > { %1269 = vrot.lane.b32.xlu1 %v681_v55, %s2264_s15  ;;  %s1552_s15 = scalar_lea.hbm %s2758_s10, %s1749_s28 }
 0x305   : > { %v938_v57 = vpop.permute.xlu0 %937 }
 0x306   : > { %1816 = vmatpush3.xpose.msk.msra.mxu0 %vm768_vm6, %v938_v57 }
 0x307   : > { %1825 = vmatprep.subr.mxu0 %v2261_v16 }
 0x309   : > { %v936_v58 = vpop.permute.xlu1 %935  ;;  %v1272_v61 = vpop.permute.xlu0 %1271 }
 0x30a   : > { %1818 = vmatmul.mubr.msk.f32.vlgmr.msra.gmra.mxu0 %vm768_vm6, %v936_v58  ;;  %v1456_v58 = vld [vmem:[#allocation11 + $0x18] sm:$0xff] }
 0x30b   : > { %1827 = vmatprep.mubr.msk.f32.mxu0 %vm2262_vm1, %v2261_v16 }
 0x30d   : > { %v1105_v59 = vpop.permute.xlu1 %1104 }
 0x30e   : > { %1826 = vmatpush3.xpose.msk.msra.mxu0 %vm768_vm6, %v1105_v59  ;;  %v1455_v59 = vld [vmem:[#allocation11 + $0x10] sm:$0xff] }
 0x30f   : > { %1835 = vmatprep.subr.mxu0 %v2261_v16 }
 0x311   : > { %v1103_v60 = vpop.permute.xlu1 %1102 }
 0x312   : > { %1828 = vmatmul.mubr.msk.f32.vlgmr.msra.gmra.mxu0 %vm768_vm6, %v1103_v60 }
 0x313   : > { %1836 = vmatpush3.xpose.msk.msra.mxu0 %vm768_vm6, %v1272_v61  ;;  %1837 = vmatprep.mubr.msk.f32.mxu0 %vm2262_vm1, %v2261_v16  ;;  %v1454_v61 = vld [vmem:[#allocation11 + $0x8] sm:$0xff] }
 0x314   : > { %1845 = vmatprep.subr.mxu0 %v2261_v16 }
 0x315   : > { %v1270_v62 = vpop.permute.xlu1 %1269 }
 0x316   : > { %1838 = vmatmul.mubr.msk.f32.vlgmr.msra.gmra.mxu0 %vm768_vm6, %v1270_v62 }
 0x317   : > { %1853 = vmatprep.mubr.msk.f32.mxu0 %vm2262_vm1, %v2261_v16  ;;  %1846 = vmatpush3.msra.mxu0 %v1456_v58 }
 0x318   : > { %1847 = vmatprep.subr.mxu0 %v2261_v16 }
 0x319   : > { %1848 = vmatpush3.msra.mxu0 %v1455_v59 }
 0x31a   : > { %1849 = vmatprep.subr.mxu0 %v2261_v16 }
 0x31b   : > { %1850 = vmatpush3.msra.mxu0 %v1454_v61 }
 0x31c   : > { %1851 = vmatprep.subr.mxu0 %v2261_v16 }
 0x358   : > { %v841_v0 = vpop.f32.mrf.mxu1 }
 0x359   : > { %v845_v2 = vmul.f32 0.35355338, %v841_v0 }
 0x35a   : > { %v1809_v3 = vpop.f32.mrf.mxu1 }
 0x35b   : > { %v847_v4 = vsel %vm846_vm7, -1e+09, %v845_v2 }
 0x35c   : > { %v848_v5 = vsel %vm768_vm6, %v847_v4, -inf }
 0x35d   : > { %849 = vmax.xlane.f32.xlu0 %v848_v5 }
 0x3ca   : > { %v1009_v6 = vpop.f32.mrf.mxu0 }
 0x3cb   : > { %v1013_v7 = vmul.f32 0.35355338, %v1009_v6 }
 0x3cc   : > { %v1819_v8 = vpop.f32.mrf.mxu0 }
 0x3cd   : > { %v1014_v9 = vsel %vm846_vm7, -1e+09, %v1013_v7 }
 0x3ce   : > { %v1015_v10 = vsel %vm768_vm6, %v1014_v9, -inf }
 0x3cf   : > { %1016 = vmax.xlane.f32.xlu1 %v1015_v10 }
 0x3d2   : > { %v1176_v11 = vpop.f32.mrf.mxu0 }
 0x3d3   : > { %v1180_v12 = vmul.f32 0.35355338, %v1176_v11 }
 0x3d4   : > { %v1829_v13 = vpop.f32.mrf.mxu0 }
 0x3d5   : > { %v1181_v14 = vsel %vm846_vm7, -1e+09, %v1180_v12  ;;  %v1746_v12 = vld [vmem:[%s2757_s21] ss:$0 sm:$0xff] }
 0x3d6   : > { %v1343_v15 = vpop.f32.mrf.mxu0  ;;  %v1182_v17 = vsel %vm768_vm6, %v1181_v14, -inf }
 0x3d7   : > { %v1347_v18 = vmul.f32 0.35355338, %v1343_v15  ;;  %1183 = vmax.xlane.f32.xlu0 %v1182_v17 }
 0x3d8   : > { %v1839_v19 = vpop.f32.mrf.mxu0 }
 0x3d9   : > { %v1348_v20 = vsel %vm846_vm7, -1e+09, %v1347_v18 }
 0x3da   : > { %v1349_v21 = vsel %vm768_vm6, %v1348_v20, -inf }
 0x3db   : > { %1350 = vmax.xlane.f32.xlu0 %v1349_v21 }
 0x3e6   : > { %v850_v22 = vpop.xlane.xlu0 %849 }
 0x3e7   : > { %v851_v23 = vsub.f32 %v847_v4, %v850_v22  ;;  %v1453_v4 = vld [vmem:[#allocation11] sm:$0xff] }
 0x3e8   : > { %1852 = vmatpush3.msra.mxu0 %v1453_v4 }
 0x3e9   : > { %v852_v24 = vmul.f32 1.442695, %v851_v23 }
 0x3eb   : > { %1981 = vpow2.f32 %v852_v24 }
 0x3f8   : > { %v1982_v25 = vpop.eup %1981 }
 0x3f9   : > { %v854_v26 = vsel %vm768_vm6, %v1982_v25, 0.0 }
 0x3fa   : > { %855 = vadd.xlane.f32.xlu0 %v854_v26 }
 0x458   : > { %v1017_v27 = vpop.xlane.xlu1 %1016 }
 0x459   : > { %v1018_v28 = vsub.f32 %v1014_v9, %v1017_v27 }
 0x45b   : > { %v1019_v29 = vmul.f32 1.442695, %v1018_v28 }
 0x45d   : > { %1983 = vpow2.f32 %v1019_v29 }
 0x460   : > { %v1184_v30 = vpop.xlane.xlu0 %1183 }
 0x461   : > { %v1185_v31 = vsub.f32 %v1181_v14, %v1184_v30 }
 0x463   : > { %v1186_v32 = vmul.f32 1.442695, %v1185_v31 }
 0x464   : > { %v1351_v37 = vpop.xlane.xlu0 %1350 }
 0x465   : > { %1985 = vpow2.f32 %v1186_v32  ;;  %v1352_v38 = vsub.f32 %v1348_v20, %v1351_v37 }
 0x467   : > { %v1353_v39 = vmul.f32 1.442695, %v1352_v38 }
 0x469   : > { %1987 = vpow2.f32 %v1353_v39 }
 0x46a   : > { %v1984_v33 = vpop.eup %1983 }
 0x46b   : > { %v1021_v34 = vsel %vm768_vm6, %v1984_v33, 0.0 }
 0x46c   : > { %1022 = vadd.xlane.f32.xlu1 %v1021_v34 }
 0x472   : > { %v1986_v35 = vpop.eup %1985 }
 0x473   : > { %v1188_v36 = vsel %vm768_vm6, %v1986_v35, 0.0 }
 0x474   : > { %1189 = vadd.xlane.f32.xlu0 %v1188_v36 }
 0x476   : > { %v1988_v40 = vpop.eup %1987 }
 0x477   : > { %v1355_v41 = vsel %vm768_vm6, %v1988_v40, 0.0 }
 0x47d   : > { %1026 = vrot.lane.b32.xlu1 %v2578_v51, %s2266_s7  ;;  %s2159_s7 = scalar_lea.vmem %s1555_s22, 128 }
 0x47e   : > { %p2160_p8 = scmp.ne.s32.totalorder %s1555_s22, %s2159_s7 }
 0x480   : > { %p2161_p3 = pnand %p2160_p8, %p2759_p12 }
 0x481   : > { %1193 = vrot.lane.b32.xlu1 %v2578_v51, %s2267_s26  ;;  %s2165_s26 = scalar_lea.vmem %s2164_s16, 256 }
 0x482   : > { %p2162_p9 = pneg %p2161_p3  ;;  %p2167_p7 = scmp.lt.s32.totalorder %s2165_s26, %s2159_s7 }
 0x483   : > { %v856_v42 = vpop.xlane.xlu0 %855 }
 0x484   : > { %1989 = vrcp.f32 %v856_v42  ;;  %p2168_p10 = por %p2167_p7, %p2166_p0 }
 0x486   : > { %p2169_p13 = pnand %p2168_p10, %p2162_p9 }
 0x48a   : > { %859 = vrot.lane.b32.xlu0 %v2578_v51, %s2268_s12 }
 0x491   : > { %v1990_v45 = vpop.eup %1989 }
 0x492   : > { %v858_v48 = vmul.f32 %v1990_v45, %v1982_v25 }
 0x4a5   : > { %1356 = vadd.xlane.f32.xlu1 %v1355_v41 }
 0x4b6   : > { %1360 = vrot.lane.b32.xlu1 %v2578_v51, %s2269_s17 }
 0x4f5   : > { %v1023_v43 = vpop.xlane.xlu1 %1022 }
 0x4f6   : > { %1991 = vrcp.f32 %v1023_v43 }
 0x4f9   : > { %v1027_v46 = vpop.permute.xlu1 %1026 }
 0x4fd   : > { %v1190_v44 = vpop.xlane.xlu0 %1189  ;;  %v1194_v51 = vpop.permute.xlu1 %1193 }
 0x4fe   : > { %1993 = vrcp.f32 %v1190_v44 }
 0x501   : > { %v860_v47 = vpop.permute.xlu0 %859 }
 0x502   : > { %1811 = vmatpush3.msra.mxu1 %v860_v47 }
 0x503   : > { %v1992_v49 = vpop.eup %1991  ;;  %1813 = vmatmul.mubr.msk.f32.vlgmr.msra.gmra.mxu1 %vm768_vm6, %v858_v48  ;;  %1820 = vmatprep.subr.mxu1 %v2261_v16 }
 0x504   : > { %1821 = vmatpush3.msra.mxu1 %v1027_v46  ;;  %1822 = vmatprep.mubr.msk.f32.mxu1 %vm2262_vm1, %v2261_v16  ;;  %v1025_v50 = vmul.f32 %v1992_v49, %v1984_v33 }
 0x505   : > { %1830 = vmatprep.subr.mxu1 %v2261_v16 }
 0x507   : > { %1823 = vmatmul.mubr.msk.f32.vlgmr.msra.gmra.mxu1 %vm768_vm6, %v1025_v50 }
 0x508   : > { %1831 = vmatpush3.msra.mxu1 %v1194_v51  ;;  %1832 = vmatprep.mubr.msk.f32.mxu1 %vm2262_vm1, %v2261_v16 }
 0x509   : > { %1840 = vmatprep.subr.mxu1 %v2261_v16 }
 0x50b   : > { %v1994_v52 = vpop.eup %1993 }
 0x50c   : > { %v1192_v53 = vmul.f32 %v1994_v52, %v1986_v35 }
 0x50e   : > { %1833 = vmatmul.mubr.msk.f32.vlgmr.msra.gmra.mxu1 %vm768_vm6, %v1192_v53 }
 0x50f   : > { %1842 = vmatprep.mubr.msk.f32.mxu1 %vm2262_vm1, %v2261_v16 }
 0x52e   : > { %v1357_v54 = vpop.xlane.xlu1 %1356 }
 0x52f   : > { %1995 = vrcp.f32 %v1357_v54 }
 0x532   : > { %v1361_v55 = vpop.permute.xlu1 %1360 }
 0x533   : > { %1841 = vmatpush3.msra.mxu1 %v1361_v55 }
 0x53c   : > { %v1996_v56 = vpop.eup %1995 }
 0x53d   : > { %v1359_v57 = vmul.f32 %v1996_v56, %v1988_v40 }
 0x53f   : > { %1843 = vmatmul.mubr.msk.f32.vlgmr.msra.gmra.mxu1 %vm768_vm6, %v1359_v57 }
 0x5c3   : > { %v931_v60 = vpop.f32.mrf.mxu1 }
 0x5c5   : > { %v1814_v62 = vpop.f32.mrf.mxu1 }
 0x5c7   : > { %v1098_v63 = vpop.f32.mrf.mxu1 }
 0x5c8   : > { %1437 = vrot.lane.b32.xlu0 %v1098_v63, %s2270_s27 }
 0x5c9   : > { %v1824_v0 = vpop.f32.mrf.mxu1 }
 0x5ce   : > { %v1265_v2 = vpop.f32.mrf.mxu1 }
 0x5cf   : > { %1441 = vrot.lane.b32.xlu1 %v1265_v2, %s2271_s14 }
 0x5d0   : > { %v1834_v3 = vpop.f32.mrf.mxu1 }
 0x5ff   : > { %v1432_v5 = vpop.f32.mrf.mxu1 }
 0x600   : > { %1445 = vrot.lane.b32.xlu0 %v1432_v5, %s2272_s13 }
 0x601   : > { %v1844_v6 = vpop.f32.mrf.mxu1 }
 0x63a   : > { %v1438_v7 = vpop.permute.xlu0 %1437 }
 0x63b   : > { %v1448_v9 = vsel %vm768_vm6, %v931_v60, %v1438_v7 }
 0x641   : > { %v1442_v8 = vpop.permute.xlu1 %1441 }
 0x642   : > { %v1450_v16 = vsel %vm1449_vm8, %v1448_v9, %v1442_v8 }
 0x672   : > { %v1446_v10 = vpop.permute.xlu0 %1445 }
 0x673   : > { %v1452_v11 = vsel %vm1451_vm9, %v1450_v16, %v1446_v10 }
 0x674   : > { %1854 = vmatmul.mubr.msk.f32.vlgmr.msra.gmra.mxu0 %vm542_vm0, %v1452_v11 }
 0x734   : > { %v1533_v13 = vpop.f32.mrf.mxu0 }
 0x735   : > { %v1534_v14 = vadd.f32 %v1746_v12, %v1533_v13 }
 0x736   : > { %v1855_v15 = vpop.f32.mrf.mxu0 }
 0x737   : > { %v1537_v17 = vadd.f32 %v1534_v14, %v2531_v1 }
 0x739   : > { %1538 = vst.msk [vmem:[%s536_s11] sm:$0xff] %vm542_vm0, %v1537_v17 }
 0x73a   : > { %2172 = shalt.err (!%p2169_p13)
}
 0x73b   : > { %s2173_s12 = scalar_lea.hbm %s1552_s15, 128  ;;  %s2177_s27 = scalar_lea.hbm %s2758_s10, 256 }
 0x73c   : > { %p2174_p5 = scmp.ne.s32.totalorder %s1552_s15, %s2173_s12  ;;  %p2178_p1 = scmp.lt.s32.totalorder %s1552_s15, %s2758_s10 }
 0x73d   : > { %p2179_p6 = scmp.lt.s32.totalorder %s2177_s27, %s2173_s12 }
 0x73e   : > { %p2175_p11 = pnand %p2174_p5, %p2759_p12 }
 0x73f   : > { %p2180_p4 = por %p2179_p6, %p2178_p1 }
 0x740   : > { %p2176_p2 = pneg %p2175_p11 }
 0x742   : > { %p2181_p8 = pnand %p2180_p4, %p2176_p2 }
 0x744   : > { %2184 = shalt.err (!%p2181_p8)
}
 0x745   : > { %1874 = dma.vmem_to_hbm [thread:$0]  (%p2759_p12), %s1555_s22, 128, %s1552_s15, %s1540_s1  }
 0x746 PF: > { %s2760_s23 = sld [smem:[#allocation19_spill]] }
 0x747   : > { %s2761_s25 = sld [smem:[#allocation22_spill]] }
 0x748   : > { %s2762_s21 = sld [smem:[#allocation21_spill]] }
 0x74c   : > { %s1566_s28 = sand.u32 1, %s2760_s23  }
 0x74d   : > { %p2763_p3 = scmp.ne.s32.totalorder %s2761_s25, 0  ;;  %s1567_s11 = scalar_lea.sflag [#allocation4], %s1566_s28 }
 0x74e   : > { %p2764_p9 = scmp.ge.s32.totalorder %s2762_s21, 2 }
 0x750   : > { %p1897_p0 = pnand %p2764_p9, %p2763_p3 }
 0x752   : > { %p1898_p7 = pneg %p1897_p0 }
 0x754   : > { %2226 = dma.done.wait (%p1898_p7), %s1567_s11, 128  }
 0x755   : > { %2228 = vsyncadd (%p1898_p7), %s1567_s11, 4294967168  ;;  %s32_s22 = sadd.s32 1, %s2762_s21   ;;  %s2765_s24 = sld [smem:[#allocation25_spill]] }
 0x756   : > { %p29_p10 = scmp.ge.s32.totalorder %s32_s22, 4   ;;  %s2766_s20 = sld [smem:[#allocation20_spill]] }
 0x757   : > { %s2767_s21 = sld [smem:[#allocation23_spill]]  ;;  %s2768_s17 = smov %s2235_s18 }
 0x758   : > { %s2769_s18 = smov %s2239_s19  ;;  %31 = sbr.rel (!%p29_p10) target bundleno = 16 (0x10), region = 145 }
 0x75b   : > { %s2770_s19 = smov %s2765_s24 }
 0x75d   :  { %1572 = vsyncpa [#allocation3], 1 }
 0x75e   :  { %1574 = vsyncpa [#allocation3 + $0x1], 1 }
 0x75f   :  { %1575 = vsyncpa [#allocation6], 1 }
 0x760   :  { %1577 = vsyncpa [#allocation6 + $0x1], 1 }
 0x761   :  { %1578 = vsyncpa [#allocation9], 1 }
 0x762   :  { %1579 = vsyncpa [#allocation12], 1 }
 0x763   :  { %1580 = vsyncpa [#allocation4], 1 }
 0x764   :  { %1582 = vsyncpa [#allocation4 + $0x1], 1 }

</bundles_post_ra>
